<compile_context>
chip_gen: v5e
topology: v5e:2x2
jax: 0.10.0
libtpu: 0.0.40
codegen_flags: <defaults>
</compile_context>

<pallas_src>
import functools

import jax
import jax.numpy as jnp
from jax import lax
from jax.experimental import pallas as pl
from jax.experimental.pallas import tpu as pltpu

LN_EPS = 1e-5          # PyTorch nn.LayerNorm default
_LANE = 128            # lane width (output last-dim granularity)
_TN_MAX = 512          # max weight/output column tile (multiple of 256)
_TM_MAX = 32768        # absolute row-tile sanity cap


def _cdiv(a, b):
    return -(-a // b)


def _round_up(a, b):
    return _cdiv(a, b) * b


@functools.lru_cache(maxsize=1)
def _vmem_capacity_bytes():
    try:
        return int(pltpu.get_tpu_info().vmem_capacity_bytes)
    except Exception:
        return 64 * 1024 * 1024        # conservative (v7x-sized) fallback


@functools.lru_cache(maxsize=1)
def _num_tensorcores():
    try:
        kind = jax.devices()[0].device_kind.lower()
    except Exception:
        return 1
    return 2 if "v7" in kind else 1    # v5e/v6e: single TC per chip


def _vmem_limit_bytes():
    # ~96 MiB on 128 MiB parts, ~48 MiB on v7x (64 MiB VMEM).
    return min(int(_vmem_capacity_bytes() * 0.75), 100 * 1024 * 1024)


def _tile_budget_bytes():
    # ~38 MiB on 128 MiB parts, ~19 MiB on v7x.
    return min(int(_vmem_capacity_bytes() * 0.30), 48 * 1024 * 1024)


def _invariant_spec(shape, index_map):
    """BlockSpec for grid-invariant blocks: single-buffered (no double-buffer
    VMEM waste); falls back gracefully if pipeline_mode is unavailable."""
    try:
        return pl.BlockSpec(shape, index_map, pipeline_mode=pl.Buffered(1))
    except (AttributeError, TypeError):
        return pl.BlockSpec(shape, index_map)


def _pick_tm(rows, in_row_bytes, out_row_bytes, f32_row_bytes=0,
             extra_bytes=0, want_split=False):
    """Largest row tile whose double-buffered in/out tiles plus in-kernel f32
    temporaries fit the generation-aware VMEM tile budget."""
    budget = max(_tile_budget_bytes() - extra_bytes, 1 << 20)
    per_row = 2 * (in_row_bytes + out_row_bytes) + f32_row_bytes
    tm = budget // max(per_row, 1)
    tm = int(max(8, min(tm, _TM_MAX)))
    tm -= tm % 8
    rows8 = _round_up(rows, 8)
    if rows8 <= tm:
        # Small problem: split into >=2 blocks only on multi-TC chips (v7x)
        # so the "parallel" grid axis can shard across both TensorCores.
        if want_split and rows8 >= 16:
            tm = _round_up(_cdiv(rows8, 2), 8)
        else:
            tm = rows8
    return tm


def _pick_tn(f_p):
    """Column tile for the projection weight / output (f_p is a mult of 128)."""
    if f_p <= _TN_MAX:
        return f_p
    for cand in (512, 384, 256, 128):
        if f_p % cand == 0:
            return cand
    return _LANE


def _pad_cols_to_lane(w):
    f = w.shape[-1]
    f_p = _round_up(max(f, _LANE), _LANE)
    if f_p == f:
        return w
    return jnp.pad(w, ((0, 0), (0, f_p - f)))


# ----------------------------- Pallas kernels ------------------------------ #
def _ln_kernel(x_ref, w_ref, b_ref, o_ref):
    # x_ref: (tm, D) tile; w_ref/b_ref: (1, D) affine params.
    x = x_ref[...].astype(jnp.float32)
    mean = jnp.mean(x, axis=-1, keepdims=True)
    xc = x - mean
    var = jnp.mean(xc * xc, axis=-1, keepdims=True)        # biased var (torch)
    y = xc * lax.rsqrt(var + LN_EPS)
    o_ref[...] = (y * w_ref[...].astype(jnp.float32)
                  + b_ref[...].astype(jnp.float32)).astype(o_ref.dtype)


def _ln_matmul_kernel(x_ref, w_ref, b_ref, p_ref, o_ref):
    # Fused LayerNorm + projection: o = LN(x) @ P
    # x_ref: (tm, D); w_ref/b_ref: (1, D); p_ref: (D, tn); o_ref: (tm, tn)
    x = x_ref[...].astype(jnp.float32)
    mean = jnp.mean(x, axis=-1, keepdims=True)
    xc = x - mean
    var = jnp.mean(xc * xc, axis=-1, keepdims=True)
    y = (xc * lax.rsqrt(var + LN_EPS) * w_ref[...].astype(jnp.float32)
         + b_ref[...].astype(jnp.float32))
    # Feed the MXU operands in the weight dtype (bf16 native on v5e..v7x);
    # accumulation stays f32 via preferred_element_type.
    o_ref[...] = jnp.dot(y.astype(p_ref.dtype), p_ref[...],
                         preferred_element_type=jnp.float32).astype(o_ref.dtype)


# ------------------------------- wrappers ---------------------------------- #
def layernorm_pallas(x, weight, bias):
    """LayerNorm over the last axis of x, affine params of shape (D,)."""
    orig_shape = x.shape
    d = x.shape[-1]
    x2 = x.reshape(-1, d)
    rows = x2.shape[0]

    in_b = x2.dtype.itemsize
    out_b = jnp.dtype(x.dtype).itemsize
    f32_row = 4 * 2 * d                      # in-kernel f32 temps (x, y)
    tm = _pick_tm(rows, d * in_b, d * out_b, f32_row_bytes=f32_row,
                  want_split=_num_tensorcores() >= 2)
    rows_p = _round_up(rows, tm)
    if rows_p != rows:
        x2 = jnp.pad(x2, ((0, rows_p - rows), (0, 0)))

    w2 = weight.reshape(1, d)
    b2 = bias.reshape(1, d)

    out = pl.pallas_call(
        _ln_kernel,
        out_shape=jax.ShapeDtypeStruct((rows_p, d), x.dtype),
        grid_spec=pltpu.PrefetchScalarGridSpec(
            num_scalar_prefetch=0,
            grid=(rows_p // tm,),
            in_specs=[
                pl.BlockSpec((tm, d), lambda i: (i, 0)),
                _invariant_spec((1, d), lambda i: (0, 0)),
                _invariant_spec((1, d), lambda i: (0, 0)),
            ],
            out_specs=pl.BlockSpec((tm, d), lambda i: (i, 0)),
        ),
        compiler_params=pltpu.CompilerParams(
            dimension_semantics=("parallel",),
            vmem_limit_bytes=_vmem_limit_bytes(),
        ),
    )(x2, w2, b2)

    if rows_p != rows:
        out = out[:rows]
    return out.reshape(orig_shape)


def layernorm_matmul_pallas(x, weight, bias, proj):
    """Fused LayerNorm(x) @ proj; LN(x) never materialized in HBM.

    The projection width is padded to a multiple of 128 internally (lane-dense
    output stores) and the result is sliced back to proj.shape[-1].
    """
    lead = x.shape[:-1]
    d = x.shape[-1]
    f = proj.shape[-1]

    f_p = _round_up(max(f, _LANE), _LANE)
    proj_p = proj if f_p == f else jnp.pad(proj, ((0, 0), (0, f_p - f)))

    x2 = x.reshape(-1, d)
    rows = x2.shape[0]

    tn = _pick_tn(f_p)
    n_col = f_p // tn

    in_b = x2.dtype.itemsize
    out_b = jnp.dtype(x.dtype).itemsize
    proj_buf = 1 if n_col == 1 else 2               # single-buffered if invariant
    proj_bytes = proj_buf * d * tn * proj_p.dtype.itemsize
    f32_row = 4 * (2 * d + tn)                      # f32 temps: x, y, dot acc
    want_split = (_num_tensorcores() >= 2) and (n_col == 1)
    tm = _pick_tm(rows, d * in_b, tn * out_b, f32_row_bytes=f32_row,
                  extra_bytes=proj_bytes, want_split=want_split)
    rows_p = _round_up(rows, tm)
    if rows_p != rows:
        x2 = jnp.pad(x2, ((0, rows_p - rows), (0, 0)))

    w2 = weight.reshape(1, d)
    b2 = bias.reshape(1, d)

    if n_col == 1:
        proj_spec = _invariant_spec((d, tn), lambda i, j: (0, j))
    else:
        proj_spec = pl.BlockSpec((d, tn), lambda i, j: (0, j))

    out = pl.pallas_call(
        _ln_matmul_kernel,
        out_shape=jax.ShapeDtypeStruct((rows_p, f_p), x.dtype),
        grid_spec=pltpu.PrefetchScalarGridSpec(
            num_scalar_prefetch=0,
            grid=(rows_p // tm, n_col),
            in_specs=[
                pl.BlockSpec((tm, d), lambda i, j: (i, 0)),
                _invariant_spec((1, d), lambda i, j: (0, 0)),
                _invariant_spec((1, d), lambda i, j: (0, 0)),
                proj_spec,
            ],
            out_specs=pl.BlockSpec((tm, tn), lambda i, j: (i, j)),
        ),
        compiler_params=pltpu.CompilerParams(
            dimension_semantics=("parallel", "parallel"),
            vmem_limit_bytes=_vmem_limit_bytes(),
        ),
    )(x2, w2, b2, proj_p)

    out = out[:rows, :f]
    return out.reshape(*lead, f)


# ------------------------ parameter preparation ----------------------------- #
def prepare_prenorm_params(params):
    """One-time weight prep: concat WK|WV and pad projection widths to a
    multiple of 128, so the forward pass pays no per-call concat / pad."""
    params = dict(params)
    fn = dict(params["fn"])
    inner = fn["wq"].shape[-1]
    fn["inner"] = inner
    fn["wq_padded"] = _pad_cols_to_lane(fn["wq"])
    if "wk" in fn and "wv" in fn:
        wkv = jnp.concatenate([fn["wk"], fn["wv"]], axis=-1)
        fn["wkv_padded"] = _pad_cols_to_lane(wkv)
    params["fn"] = fn
    return params


# ------------------------ wrapped fn (plain-JAX glue) ----------------------- #
def cross_attention_fn(params, x, context):
    # Minimal single-head cross-attention (the typical fn PreNorm wraps).
    q = x @ params["wq"]
    k = context @ params["wk"]
    v = context @ params["wv"]
    scale = q.shape[-1] ** -0.5
    sim = jnp.einsum("bnd,bmd->bnm", q, k) * scale
    attn = jax.nn.softmax(sim, axis=-1)
    out = jnp.einsum("bnm,bmd->bnd", attn, v)
    return out @ params["wo"]


def _attention_from_qkv(params, q, k, v):
    scale = q.shape[-1] ** -0.5
    sim = jnp.einsum("bnd,bmd->bnm", q, k) * scale
    attn = jax.nn.softmax(sim, axis=-1)
    out = jnp.einsum("bnm,bmd->bnd", attn, v)
    return out @ params["wo"]


# -------------------------------- PreNorm ----------------------------------- #
def prenorm_forward(params, x, context=None):
    """PreNorm(dim, fn, context_dim).forward with the LN fused into Q/K/V."""
    fn = params["fn"]
    inner = fn.get("inner", fn["wq"].shape[-1])
    wq = fn.get("wq_padded", fn["wq"])
    # LN(x) fused directly into the Q projection (no HBM round-trip of x').
    q = layernorm_matmul_pallas(x, params["ln_w"], params["ln_b"], wq)[..., :inner]
    if context is not None and "lnc_w" in params:
        # Single fused launch for the context LN + both K and V projections.
        wkv = fn.get("wkv_padded")
        if wkv is None:
            wkv = jnp.concatenate([fn["wk"], fn["wv"]], axis=-1)
        kv = layernorm_matmul_pallas(context, params["lnc_w"], params["lnc_b"], wkv)
        k, v = kv[..., :inner], kv[..., inner:2 * inner]
    else:
        # TODO(synk): context-free path would need fn's self-attention variant;
        # demo always passes context (as Perceiver's cross-attend does).
        raise NotImplementedError("demo PreNorm is used with context")
    return _attention_from_qkv(fn, q, k, v)


# ------------------------------- reference ----------------------------------- #
def layernorm_ref(x, w, b):
    xf = x.astype(jnp.float32)
    mean = jnp.mean(xf, axis=-1, keepdims=True)
    var = jnp.mean((xf - mean) ** 2, axis=-1, keepdims=True)
    return ((xf - mean) * lax.rsqrt(var + LN_EPS) * w + b).astype(x.dtype)


if __name__ == "__main__":
    key = jax.random.PRNGKey(0)
    B, N, D = 2, 8, 32       # x: latents
    M, C = 16, 64            # context: input array
    INNER = 32

    keys = jax.random.split(key, 10)
    x = jax.random.normal(keys[0], (B, N, D), jnp.float32)
    context = jax.random.normal(keys[1], (B, M, C), jnp.float32)

    params = {
        "ln_w": jax.random.normal(keys[2], (D,), jnp.float32) * 0.1 + 1.0,
        "ln_b": jax.random.normal(keys[3], (D,), jnp.float32) * 0.1,
        "lnc_w": jax.random.normal(keys[4], (C,), jnp.float32) * 0.1 + 1.0,
        "lnc_b": jax.random.normal(keys[5], (C,), jnp.float32) * 0.1,
        "fn": {
            "wq": jax.random.normal(keys[6], (D, INNER), jnp.float32) * 0.1,
            "wk": jax.random.normal(keys[7], (C, INNER), jnp.float32) * 0.1,
            "wv": jax.random.normal(keys[8], (C, INNER), jnp.float32) * 0.1,
            "wo": jax.random.normal(keys[9], (INNER, D), jnp.float32) * 0.1,
        },
    }
    prepared = prepare_prenorm_params(params)

    out = prenorm_forward(prepared, x, context=context)
    jax.block_until_ready(out)

    # 1) standalone Pallas LayerNorm vs pure-JAX reference
    xn_r = layernorm_ref(x, params["ln_w"], params["ln_b"])
    cn_r = layernorm_ref(context, params["lnc_w"], params["lnc_b"])
    assert jnp.allclose(layernorm_pallas(x, params["ln_w"], params["ln_b"]),
                        xn_r, atol=1e-5, rtol=1e-5)
    assert jnp.allclose(layernorm_pallas(context, params["lnc_w"], params["lnc_b"]),
                        cn_r, atol=1e-5, rtol=1e-5)

    # 2) ragged row count (exercises cdiv grid + padding path)
    xr = jax.random.normal(keys[0], (3, 5, D), jnp.float32)
    assert jnp.allclose(layernorm_pallas(xr, params["ln_w"], params["ln_b"]),
                        layernorm_ref(xr, params["ln_w"], params["ln_b"]),
                        atol=1e-5, rtol=1e-5)

    # 3) fused LN+matmul kernel vs reference (raw, unpadded weight path)
    q_r = xn_r @ params["fn"]["wq"]
    q_k = layernorm_matmul_pallas(x, params["ln_w"], params["ln_b"], params["fn"]["wq"])
    assert jnp.allclose(q_k, q_r, atol=1e-4, rtol=1e-4)

    # 4) fused LN+matmul with the pre-padded (lane-dense) weight path
    q_k2 = layernorm_matmul_pallas(x, params["ln_w"], params["ln_b"],
                                   prepared["fn"]["wq_padded"])[..., :INNER]
    assert jnp.allclose(q_k2, q_r, atol=1e-4, rtol=1e-4)

    # 5) full PreNorm forward vs unfused reference
    out_ref = cross_attention_fn(params["fn"], xn_r, cn_r)
    assert out.shape == (B, N, D)
    assert jnp.allclose(out, out_ref, atol=1e-4, rtol=1e-4)

    print("KERNEL_OK")
</pallas_src>

<mosaic_0001>
module attributes {stable_mosaic.version = 11 : i64} {
  func.func @_ln_matmul_kernel(%arg0: i32, %arg1: i32, %arg2: memref<16x32xf32, #tpu.memory_space<vmem>>, %arg3: memref<1x32xf32, #tpu.memory_space<vmem>>, %arg4: memref<1x32xf32, #tpu.memory_space<vmem>>, %arg5: memref<32x128xf32, #tpu.memory_space<vmem>>, %arg6: memref<16x128xf32, #tpu.memory_space<vmem>>) attributes {dimension_semantics = [#tpu.dimension_semantics<parallel>, #tpu.dimension_semantics<parallel>], iteration_bounds = array<i64: 1, 1>, scalar_prefetch = 0 : i64, scratch_operands = 0 : i64, tpu.core_type = #tpu.core_type<tc>, window_params = [{transform_indices = @transform_0, window_bounds = array<i64: 16, 32>}, {pipeline_mode = #tpu.pipeline_mode<synchronous>, transform_indices = @transform_1, window_bounds = array<i64: 1, 32>}, {pipeline_mode = #tpu.pipeline_mode<synchronous>, transform_indices = @transform_2, window_bounds = array<i64: 1, 32>}, {pipeline_mode = #tpu.pipeline_mode<synchronous>, transform_indices = @transform_3, window_bounds = array<i64: 32, 128>}, {transform_indices = @transform_4, window_bounds = array<i64: 16, 128>}]} {
    %c0 = arith.constant 0 : index
    %c0_0 = arith.constant 0 : index
    %0 = vector.load %arg2[%c0, %c0_0] : memref<16x32xf32, #tpu.memory_space<vmem>>, vector<16x32xf32>
    %cst = arith.constant dense<0.000000e+00> : vector<16xf32>
    %1 = vector.multi_reduction <add>, %0, %cst [1] : vector<16x32xf32> to vector<16xf32>
    %2 = vector.shape_cast %1 : vector<16xf32> to vector<16x1xf32>
    %cst_1 = arith.constant 3.200000e+01 : f32
    %3 = vector.broadcast %cst_1 : f32 to vector<16x1xf32>
    %4 = arith.divf %2, %3 : vector<16x1xf32>
    %5 = vector.broadcast %4 : vector<16x1xf32> to vector<16x32xf32>
    %6 = arith.subf %0, %5 : vector<16x32xf32>
    %7 = arith.mulf %6, %6 : vector<16x32xf32>
    %cst_2 = arith.constant dense<0.000000e+00> : vector<16xf32>
    %8 = vector.multi_reduction <add>, %7, %cst_2 [1] : vector<16x32xf32> to vector<16xf32>
    %9 = vector.shape_cast %8 : vector<16xf32> to vector<16x1xf32>
    %cst_3 = arith.constant 3.200000e+01 : f32
    %10 = vector.broadcast %cst_3 : f32 to vector<16x1xf32>
    %11 = arith.divf %9, %10 : vector<16x1xf32>
    %cst_4 = arith.constant 9.99999974E-6 : f32
    %12 = vector.broadcast %cst_4 : f32 to vector<16x1xf32>
    %13 = arith.addf %11, %12 : vector<16x1xf32>
    %14 = math.rsqrt %13 : vector<16x1xf32>
    %15 = vector.broadcast %14 : vector<16x1xf32> to vector<16x32xf32>
    %16 = arith.mulf %6, %15 : vector<16x32xf32>
    %c0_5 = arith.constant 0 : index
    %c0_6 = arith.constant 0 : index
    %17 = vector.load %arg3[%c0_5, %c0_6] : memref<1x32xf32, #tpu.memory_space<vmem>>, vector<1x32xf32>
    %18 = vector.broadcast %17 : vector<1x32xf32> to vector<16x32xf32>
    %19 = arith.mulf %16, %18 : vector<16x32xf32>
    %c0_7 = arith.constant 0 : index
    %c0_8 = arith.constant 0 : index
    %20 = vector.load %arg4[%c0_7, %c0_8] : memref<1x32xf32, #tpu.memory_space<vmem>>, vector<1x32xf32>
    %21 = vector.broadcast %20 : vector<1x32xf32> to vector<16x32xf32>
    %22 = arith.addf %19, %21 : vector<16x32xf32>
    %c0_9 = arith.constant 0 : index
    %c0_10 = arith.constant 0 : index
    %23 = vector.load %arg5[%c0_9, %c0_10] : memref<32x128xf32, #tpu.memory_space<vmem>>, vector<32x128xf32>
    %cst_11 = arith.constant dense<0.000000e+00> : vector<16x128xf32>
    %24 = tpu.matmul %22, %23, %cst_11 {dimension_numbers = #tpu.dot_dimension_numbers<[1], [0], [0], [1], [0, 0, 1, 1], [], []>} : vector<16x32xf32>, vector<32x128xf32>, vector<16x128xf32> -> vector<16x128xf32>
    %c0_12 = arith.constant 0 : index
    %c0_13 = arith.constant 0 : index
    %25 = vector.load %arg6[%c0_12, %c0_13] : memref<16x128xf32, #tpu.memory_space<vmem>>, vector<16x128xf32>
    tpu.vector_store %arg6[%c0_12, %c0_13], %24 {strides = array<i32>} : memref<16x128xf32, #tpu.memory_space<vmem>>, vector<16x128xf32>,
    return
  }
  func.func @transform_0(%arg0: i32, %arg1: i32) -> (i32, i32) {
    %c0_i32 = arith.constant 0 : i32
    %c0_i32_0 = arith.constant 0 : i32
    return %arg0, %c0_i32 : i32, i32
  }
  func.func @transform_1(%arg0: i32, %arg1: i32) -> (i32, i32) {
    %c0_i32 = arith.constant 0 : i32
    %c0_i32_0 = arith.constant 0 : i32
    %c0_i32_1 = arith.constant 0 : i32
    return %c0_i32, %c0_i32_0 : i32, i32
  }
  func.func @transform_2(%arg0: i32, %arg1: i32) -> (i32, i32) {
    %c0_i32 = arith.constant 0 : i32
    %c0_i32_0 = arith.constant 0 : i32
    %c0_i32_1 = arith.constant 0 : i32
    return %c0_i32, %c0_i32_0 : i32, i32
  }
  func.func @transform_3(%arg0: i32, %arg1: i32) -> (i32, i32) {
    %c0_i32 = arith.constant 0 : i32
    %c0_i32_0 = arith.constant 0 : i32
    return %c0_i32, %arg1 : i32, i32
  }
  func.func @transform_4(%arg0: i32, %arg1: i32) -> (i32, i32) {
    %c0_i32 = arith.constant 0 : i32
    return %arg0, %arg1 : i32, i32
  }
}

</mosaic_0001>

<bundles_post_ra>
// kernel: tpu_custom_call.1
= control target key start
LH: loop header
LB: loop body
LE: loop exit
PB: predicated region body
PF: predicated region fallthrough
CT: control target
= control target key end

     0   :  { %9 = vsyncpa [#allocation3], 0  ;;  %s369_s0 = inlined_call_operand.hbm [shape: f32[16,32], index: 0, kind: input, shape index: {}]   ;;  %s370_s1 = inlined_call_operand.hbm [shape: f32[1,32], index: 1, kind: input, shape index: {}]   ;;  %s371_s2 = inlined_call_operand.vmem [shape: f32[1,32], index: 2, kind: input, shape index: {}]   ;;  %s372_s3 = inlined_call_operand.hbm [shape: f32[32,128], index: 3, kind: input, shape index: {}]   ;;  %s373_s4 = inlined_call_operand.hbm [shape: f32[16,128], index: 4, kind: output, shape index: {}]  }
   0x1   :  { %10 = vsyncpa [#allocation6], 0  ;;  %s30_s17 = sshll.u32 %s370_s1, 4  ;;  %s31_s17 = int_to_ptr.hbm [resolvable:$true] %s30_s17 }
   0x2   :  { %11 = vsyncpa [#allocation4], 0  ;;  %s307_s18 = smov [#allocation5]   ;;  %s16_s22 = sshll.u32 %s369_s0, 4  ;;  %s17_s22 = int_to_ptr.hbm [resolvable:$true] %s16_s22 }
   0x3   :  { %s32_s19 = sshll.u32 %s307_s18, 4  ;;  %s308_s23 = smov [#allocation2]   ;;  %s33_s19 = int_to_ptr.vmem [resolvable:$true] %s32_s19 }
   0x4   :  { %35 = dma.hbm_to_vmem [thread:$0]  %s31_s17, 16, %s33_s19, [#allocation6]  }
   0x5   :  { %s18_s24 = sshll.u32 %s308_s23, 4  ;;  %s309_s25 = smov 128   ;;  %s19_s24 = int_to_ptr.vmem [resolvable:$true] %s18_s24 }
   0x6   :  { %s310_s26 = smov 8   ;;  %s42_s28 = sshll.u32 %s372_s3, 4  ;;  %s43_s28 = int_to_ptr.hbm [resolvable:$true] %s42_s28 }
   0x7   :  { %24 = dma.hbm_to_vmem [thread:$0]  %s17_s22, 256, %s19_s24, [#allocation3], %s309_s25, %s309_s25, %s310_s26  }
   0x8   :  { %s311_s29 = smov [#allocation7]  }
   0x9   :  { %s44_s30 = sshll.u32 %s311_s29, 4  ;;  %s45_s30 = int_to_ptr.vmem [resolvable:$true] %s44_s30 }
   0xa   :  { %50 = dma.hbm_to_vmem [thread:$0]  %s43_s28, 512, %s45_s30, [#allocation6], %s309_s25, %s309_s25, %s310_s26  }
   0xb   :  { %301 = dma.done.wait [#allocation3], 256  }
   0xc   :  { %302 = vsyncadd [#allocation3], 4294967040 }
   0xd   :  { %303 = dma.done.wait [#allocation6], 528  }
   0xe   :  { %304 = vsyncadd [#allocation6], 4294966768  ;;  %vm65_vm0 = vcmask 261120   ;;  %v63_v0 = vld [vmem:[#allocation2] sm:$0xff]  ;;  %v64_v2 = vld [vmem:[#allocation2 + $0x8] sm:$0xff]  ;;  %v312_v4 = vmov 32.0  }
   0xf   :  { %v66_v1 = vsel %vm65_vm0, %v63_v0, 0.0  ;;  %v69_v3 = vsel %vm65_vm0, %v64_v2, 0.0  ;;  %199 = vrcp.f32 %v312_v4  ;;  %v132_v21 = vld [vmem:[#allocation7 + $0x18] sm:$0xff]  ;;  %v131_v22 = vld [vmem:[#allocation7 + $0x10] sm:$0xff]  ;;  %v130_v23 = vld [vmem:[#allocation7 + $0x8] sm:$0xff]  ;;  %s313_s5 = smov [#allocation8]  }
  0x10   :  { %67 = vadd.xlane.f32.xlu0 %v66_v1  ;;  %151 = vmatpush.msra.mxu0 %v132_v21  ;;  %v129_v24 = vld [vmem:[#allocation7] sm:$0xff]  ;;  %v197_v39 = vld [vmem:[#allocation5] ss:$0 sm:$0xff]  ;;  %v198_v43 = vld [vmem:[%s371_s2] ss:$0 sm:$0xff]  ;;  %s168_s2 = sshll.u32 %s313_s5, 4  ;;  %s169_s2 = int_to_ptr.vmem [resolvable:$true] %s168_s2 }
  0x11   :  { %186 = vmatpush.msra.mxu1 %v132_v21  ;;  %s170_s8 = sshll.u32 %s373_s4, 4  ;;  %s171_s8 = int_to_ptr.hbm [resolvable:$true] %s170_s8 }
  0x12   :  { %152 = vmatpush.msra.mxu0 %v131_v22 }
  0x13   :  { %187 = vmatpush.msra.mxu1 %v131_v22 }
  0x14   :  { %153 = vmatpush.msra.mxu0 %v130_v23 }
  0x15   :  { %v200_v5 = vpop.eup %199  ;;  %188 = vmatpush.msra.mxu1 %v130_v23 }
  0x16   :  { %v73_v6 = vmul.f32 32.0, %v200_v5  ;;  %vm77_vm1 = vweird.f32 %v200_v5  ;;  %154 = vmatpush.msra.mxu0 %v129_v24 }
  0x17   :  { %189 = vmatpush.msra.mxu1 %v129_v24 }
  0x18   :  { %70 = vadd.xlane.f32.xlu0 %v69_v3  ;;  %v74_v7 = vsub.f32 1.0, %v73_v6 }
  0x1a   :  { %v75_v8 = vmul.f32 %v200_v5, %v74_v7 }
  0x1c   :  { %v76_v9 = vadd.f32 %v200_v5, %v75_v8 }
  0x1e   :  { %v78_v10 = vsel %vm77_vm1, %v200_v5, %v76_v9 }
  0x83   :  { %v68_v11 = vpop.xlane.xlu0 %67 }
  0x84   :  { %v79_v12 = vmul.f32 %v78_v10, %v68_v11 }
  0x86   :  { %v81_v13 = vsub.f32 %v63_v0, %v79_v12 }
  0x88   :  { %v83_v14 = vmul.f32 %v81_v13, %v81_v13 }
  0x8a   :  { %v85_v15 = vsel %vm65_vm0, %v83_v14, 0.0 }
  0x8b   :  { %86 = vadd.xlane.f32.xlu1 %v85_v15  ;;  %v71_v16 = vpop.xlane.xlu0 %70 }
  0x8c   :  { %v80_v17 = vmul.f32 %v78_v10, %v71_v16 }
  0x8e   :  { %v82_v18 = vsub.f32 %v64_v2, %v80_v17 }
  0x90   :  { %v84_v19 = vmul.f32 %v82_v18, %v82_v18 }
  0x92   :  { %v88_v20 = vsel %vm65_vm0, %v84_v19, 0.0 }
  0x93   :  { %89 = vadd.xlane.f32.xlu1 %v88_v20 }
  0xfe   :  { %v87_v25 = vpop.xlane.xlu1 %86 }
  0xff   :  { %v91_v26 = vmul.f32 %v87_v25, %v78_v10 }
 0x101   :  { %v93_v27 = vadd.f32 1e-05, %v91_v26 }
 0x103   :  { %201 = vrsqrt.f32 %v93_v27  ;;  %vm101_vm3 = vweird.f32 %v93_v27 }
 0x106   :  { %v90_v28 = vpop.xlane.xlu1 %89 }
 0x107   :  { %v92_v29 = vmul.f32 %v90_v28, %v78_v10 }
 0x109   :  { %v202_v30 = vpop.eup %201  ;;  %v94_v31 = vadd.f32 1e-05, %v92_v29 }
 0x10a   :  { %v96_v32 = vmul.f32 %v202_v30, %v93_v27  ;;  %vm102_vm2 = vweird.f32 %v202_v30 }
 0x10b   :  { %203 = vrsqrt.f32 %v94_v31  ;;  %vm103_vm4 = vmor %vm101_vm3, %vm102_vm2  ;;  %vm111_vm6 = vweird.f32 %v94_v31 }
 0x10c   :  { %v97_v33 = vmul.f32 %v202_v30, %v96_v32 }
 0x10e   :  { %v98_v34 = vmul.f32 0.5, %v97_v33 }
 0x110   :  { %v99_v35 = vsub.f32 1.5, %v98_v34 }
 0x111   :  { %v204_v36 = vpop.eup %203 }
 0x112   :  { %v100_v37 = vmul.f32 %v202_v30, %v99_v35  ;;  %v106_v38 = vmul.f32 %v204_v36, %v94_v31  ;;  %vm112_vm5 = vweird.f32 %v204_v36 }
 0x113   :  { %vm113_vm7 = vmor %vm111_vm6, %vm112_vm5 }
 0x114   :  { %v104_v40 = vsel %vm103_vm4, %v202_v30, %v100_v37  ;;  %v107_v41 = vmul.f32 %v204_v36, %v106_v38 }
 0x115   :  { %v115_v42 = vmul.f32 %v104_v40, %v81_v13 }
 0x116   :  { %v108_v44 = vmul.f32 0.5, %v107_v41 }
 0x117   :  { %v121_v45 = vmul.f32 %v197_v39, %v115_v42 }
 0x118   :  { %v109_v46 = vsub.f32 1.5, %v108_v44 }
 0x119   :  { %v127_v47 = vadd.f32 %v198_v43, %v121_v45 }
 0x11a   :  { %v110_v48 = vmul.f32 %v204_v36, %v109_v46 }
 0x11b   :  { %184 = vmatmul.msk.f32.vlgmr.msra.gmra.mxu0 %vm65_vm0, %v127_v47 }
 0x11c   :  { %v114_v49 = vsel %vm113_vm7, %v204_v36, %v110_v48 }
 0x11d   :  { %v116_v50 = vmul.f32 %v114_v49, %v82_v18 }
 0x11f   :  { %v122_v51 = vmul.f32 %v197_v39, %v116_v50 }
 0x121   :  { %v128_v52 = vadd.f32 %v198_v43, %v122_v51 }
 0x123   :  { %185 = vmatmul.msk.f32.vlgmr.msra.gmra.mxu1 %vm65_vm0, %v128_v52 }
 0x198   :  { %v156_v53 = vpop.f32.mrf.mxu0 }
 0x199   :  { %162 = vst [vmem:[#allocation8] sm:$0xff] %v156_v53 }
 0x1a0   :  { %v159_v54 = vpop.f32.mrf.mxu1 }
 0x1a1   :  { %163 = vst [vmem:[#allocation8 + $0x8] sm:$0xff] %v159_v54 }
 0x1a2   :  { %176 = dma.vmem_to_hbm [thread:$0]  %s169_s2, 256, %s171_s8, [#allocation4], %s309_s25, %s309_s25, %s310_s26  }
 0x1a3   :  { %305 = dma.done.wait [#allocation4], 256  }
 0x1a4   :  { %306 = vsyncadd [#allocation4], 4294967040 }
 0x1a5   :  { %181 = vsyncpa [#allocation3], 1 }
 0x1a6   :  { %182 = vsyncpa [#allocation6], 1 }
 0x1a7   :  { %183 = vsyncpa [#allocation4], 1 }

</bundles_post_ra>
